<compile_context>
chip_gen: v6e
topology: v6e:2x2x1
jax: 0.10.0
libtpu: 0.0.40
codegen_flags: <defaults>
</compile_context>

<pallas_src>
import jax
import jax.numpy as jnp
from jax.experimental import pallas as pl
from jax.experimental.pallas import tpu as pltpu


def _round_up(x, m):
    return ((x + m - 1) // m) * m


# --------------------------------------------------------------------------
# Kernel bodies
# --------------------------------------------------------------------------
def _swiglu_partial(x_ref, w12_ref, b12_ref, wo_ref):
    """Contribution of one hidden slab to the output projection (f32)."""
    x = x_ref[...]                                            # (tm, Dp) bf16
    # Fused gate/value projection: single MXU stream over the packed slab.
    h12 = jnp.dot(x, w12_ref[...], preferred_element_type=jnp.float32)
    h12 = h12 + b12_ref[...]                                  # (tm, 2*th) f32
    th = h12.shape[1] // 2                                    # multiple of 128
    h1 = h12[:, :th]                                          # lane-aligned
    h2 = h12[:, th:]
    g = h1 * (h2 * jax.nn.sigmoid(h2))                        # SwiGLU, f32
    return jnp.dot(g.astype(wo_ref.dtype), wo_ref[...],
                   preferred_element_type=jnp.float32)        # (tm, Dp) f32


def _swiglu_kernel_f32_out(x_ref, w12_ref, b12_ref, wo_ref, bo_ref, o_ref):
    """f32 output: accumulate directly into the resident output block."""
    h = pl.program_id(1)

    @pl.when(h == 0)
    def _():
        o_ref[...] = jnp.zeros_like(o_ref)

    o_ref[...] += _swiglu_partial(x_ref, w12_ref, b12_ref, wo_ref)

    @pl.when(h == pl.num_programs(1) - 1)
    def _():
        o_ref[...] = o_ref[...] + bo_ref[...]


def _swiglu_kernel_acc(x_ref, w12_ref, b12_ref, wo_ref, bo_ref, o_ref,
                       acc_ref):
    """Non-f32 output: f32 scratch accumulator, cast on the final slab."""
    h = pl.program_id(1)

    @pl.when(h == 0)
    def _():
        acc_ref[...] = jnp.zeros_like(acc_ref)

    acc_ref[...] += _swiglu_partial(x_ref, w12_ref, b12_ref, wo_ref)

    @pl.when(h == pl.num_programs(1) - 1)
    def _():
        o_ref[...] = (acc_ref[...] + bo_ref[...]).astype(o_ref.dtype)


# --------------------------------------------------------------------------
# Tile / VMEM selection
# --------------------------------------------------------------------------
def _chip_defaults():
    """Return (vmem_budget_bytes, tm_default, th_default, two_tensorcores)."""
    try:
        info = pltpu.get_tpu_info()
        vmem_cap = int(getattr(info, "vmem_capacity_bytes",
                               128 * 1024 * 1024))
    except Exception:
        vmem_cap = 128 * 1024 * 1024
    try:
        kind = jax.devices()[0].device_kind.lower()
    except Exception:
        kind = ""
    # ~15% headroom for compiler scratch; never request more than 96 MiB.
    budget = min(int(vmem_cap * 0.85), 96 * 1024 * 1024)
    if vmem_cap <= 80 * 1024 * 1024:
        # v7x-class: 64 MiB VMEM, 2 TensorCores, ridge ~311 flops/byte.
        return budget, 512, 256, True
    if "v5" in kind:
        # v5e: ridge ~240 flops/byte -> tm=256 already compute-bound; wide th
        # halves grid steps and doubles the strided weight-slab DMA rows.
        return budget, 256, 1024, False
    # v6e / other 128 MiB chips: ridge ~655 flops/byte -> big token tiles.
    return budget, 1024, 512, False


def _vmem_footprint(tm, th, Dp, in_bytes, out_bytes, use_acc):
    """Double-buffered pipeline tiles + optional f32 accumulator scratch."""
    b = 0
    b += 2 * tm * Dp * in_bytes            # x tile
    b += 2 * Dp * (2 * th) * in_bytes      # packed [w1|w2] slab
    b += 2 * th * Dp * in_bytes            # wo slab
    b += 2 * (2 * th + Dp) * 4             # bias slabs (f32)
    b += 2 * tm * Dp * out_bytes           # output tile
    if use_acc:
        b += tm * Dp * 4                   # f32 accumulator
    return b


# --------------------------------------------------------------------------
# Wrapper
# --------------------------------------------------------------------------
def swiglu_ffn(x, w1, b1, w2, b2, wo, bo, *, compute_dtype=jnp.bfloat16,
               tm=None, th=None):
    """SwiGLU FFN: out_proj(w1(x) * silu(w2(x))).

    x: (..., D).  w1, w2: (D, H).  wo: (H, D).  b1, b2: (H,).  bo: (D,).
    Matmuls run in `compute_dtype` (default bf16) with f32 accumulation.
    """
    orig_shape = x.shape
    out_dtype = x.dtype
    D = orig_shape[-1]
    H = w1.shape[1]
    x2 = x.reshape(-1, D)
    M = x2.shape[0]

    use_acc = out_dtype != jnp.float32
    in_bytes = jnp.dtype(compute_dtype).itemsize
    out_bytes = jnp.dtype(out_dtype).itemsize

    budget, tm_d, th_d, two_cores = _chip_defaults()
    if tm is None:
        tm = tm_d
    if th is None:
        th = th_d

    Dp = _round_up(D, 128)
    th = max(128, min(_round_up(th, 128), _round_up(H, 128)))
    tm = max(16, min(_round_up(tm, 16), _round_up(M, 16)))

    # Keep both TensorCores busy on 2-TC chips for small token counts.
    if two_cores and M > 16 and _round_up(M, tm) // tm < 2:
        tm = max(16, min(tm, _round_up((M + 1) // 2, 16)))

    # VMEM-aware shrink: weight slabs (th) first, then token tile (tm).
    while (_vmem_footprint(tm, th, Dp, in_bytes, out_bytes, use_acc) > budget
           and th > 128):
        th = max(128, _round_up(th // 2, 128))
    while (_vmem_footprint(tm, th, Dp, in_bytes, out_bytes, use_acc) > budget
           and tm > 16):
        tm = max(16, _round_up(tm // 2, 16))

    Hp = _round_up(H, th)
    Mp = _round_up(M, tm)
    nH = Hp // th

    f32 = jnp.float32
    xp = jnp.pad(x2, ((0, Mp - M), (0, Dp - D))).astype(compute_dtype)
    w1p = jnp.pad(w1, ((0, Dp - D), (0, Hp - H))).astype(compute_dtype)
    w2p = jnp.pad(w2, ((0, Dp - D), (0, Hp - H))).astype(compute_dtype)
    wop = jnp.pad(wo, ((0, Hp - H), (0, Dp - D))).astype(compute_dtype)
    b1p = jnp.pad(b1, (0, Hp - H)).astype(f32)
    b2p = jnp.pad(b2, (0, Hp - H)).astype(f32)
    bop = jnp.pad(bo.reshape(1, -1), ((0, 0), (0, Dp - D))).astype(f32)

    # Pack w1/w2 (and b1/b2) interleaved at th granularity: block h of width
    # 2*th is [w1 slab h | w2 slab h] -> one DMA stream + one MXU dot.
    w12 = jnp.concatenate(
        [w1p.reshape(Dp, nH, th), w2p.reshape(Dp, nH, th)], axis=-1
    ).reshape(Dp, 2 * Hp)
    b12 = jnp.concatenate(
        [b1p.reshape(nH, th), b2p.reshape(nH, th)], axis=-1
    ).reshape(1, 2 * Hp)

    fp = _vmem_footprint(tm, th, Dp, in_bytes, out_bytes, use_acc)
    vmem_limit = int(min(budget, max(int(fp * 1.4), 32 * 1024 * 1024)))

    if use_acc:
        kernel = _swiglu_kernel_acc
        scratch_shapes = [pltpu.VMEM((tm, Dp), jnp.float32)]
    else:
        kernel = _swiglu_kernel_f32_out
        scratch_shapes = []

    out = pl.pallas_call(
        kernel,
        out_shape=jax.ShapeDtypeStruct((Mp, Dp), out_dtype),
        grid_spec=pltpu.PrefetchScalarGridSpec(
            num_scalar_prefetch=0,
            grid=(Mp // tm, nH),
            in_specs=[
                pl.BlockSpec((tm, Dp), lambda i, h: (i, 0)),      # x tile
                pl.BlockSpec((Dp, 2 * th), lambda i, h: (0, h)),  # [w1|w2]
                pl.BlockSpec((1, 2 * th), lambda i, h: (0, h)),   # [b1|b2]
                pl.BlockSpec((th, Dp), lambda i, h: (h, 0)),      # wo slab
                pl.BlockSpec((1, Dp), lambda i, h: (0, 0)),       # bo
            ],
            out_specs=pl.BlockSpec((tm, Dp), lambda i, h: (i, 0)),
            scratch_shapes=scratch_shapes,
        ),
        compiler_params=pltpu.CompilerParams(
            dimension_semantics=("parallel", "arbitrary"),
            vmem_limit_bytes=vmem_limit,
        ),
    )(xp, w12, b12, wop, bop)

    return out[:M, :D].reshape(orig_shape)


def swiglu_ffn_ref(x, w1, b1, w2, b2, wo, bo):
    h1 = x @ w1 + b1
    h2 = x @ w2 + b2
    h = h1 * (h2 * jax.nn.sigmoid(h2))
    return h @ wo + bo


if __name__ == "__main__":
    batch, seq = 2, 8
    input_dim, hidden_dim = 32, 64
    dtype = jnp.float32

    key = jax.random.PRNGKey(0)
    kx, k1, kb1, k2, kb2, ko, kbo = jax.random.split(key, 7)

    x = jax.random.normal(kx, (batch, seq, input_dim), dtype)
    # Synthetic params; (in, out) layout == nn.Linear weight transposed.
    w1 = jax.random.normal(k1, (input_dim, hidden_dim), dtype) * 0.1
    b1 = jax.random.normal(kb1, (hidden_dim,), dtype) * 0.1
    w2 = jax.random.normal(k2, (input_dim, hidden_dim), dtype) * 0.1
    b2 = jax.random.normal(kb2, (hidden_dim,), dtype) * 0.1
    wo = jax.random.normal(ko, (hidden_dim, input_dim), dtype) * 0.1
    bo = jax.random.normal(kbo, (input_dim,), dtype) * 0.1

    out = swiglu_ffn(x, w1, b1, w2, b2, wo, bo)
    jax.block_until_ready(out)
    assert out.shape == x.shape

    ref = swiglu_ffn_ref(x, w1, b1, w2, b2, wo, bo)
    max_err = float(jnp.max(jnp.abs(out - ref)))
    # bf16 matmul inputs with f32 accumulation -> loose tolerance vs f32 ref.
    assert jnp.allclose(out, ref, atol=3e-2, rtol=3e-2), (
        f"mismatch vs reference (max abs err {max_err})")

    print("KERNEL_OK")
</pallas_src>

<mosaic_0001>
module attributes {stable_mosaic.version = 11 : i64} {
  func.func @_swiglu_kernel_f32_out(%arg0: i32, %arg1: i32, %arg2: memref<16x128xbf16, #tpu.memory_space<vmem>>, %arg3: memref<128x256xbf16, #tpu.memory_space<vmem>>, %arg4: memref<1x256xf32, #tpu.memory_space<vmem>>, %arg5: memref<128x128xbf16, #tpu.memory_space<vmem>>, %arg6: memref<1x128xf32, #tpu.memory_space<vmem>>, %arg7: memref<16x128xf32, #tpu.memory_space<vmem>>) attributes {dimension_semantics = [#tpu.dimension_semantics<parallel>, #tpu.dimension_semantics<arbitrary>], iteration_bounds = array<i64: 1, 1>, scalar_prefetch = 0 : i64, scratch_operands = 0 : i64, tpu.core_type = #tpu.core_type<tc>, window_params = [{transform_indices = @transform_0, window_bounds = array<i64: 16, 128>}, {transform_indices = @transform_1, window_bounds = array<i64: 128, 256>}, {transform_indices = @transform_2, window_bounds = array<i64: 1, 256>}, {transform_indices = @transform_3, window_bounds = array<i64: 128, 128>}, {pipeline_mode = #tpu.pipeline_mode<synchronous>, transform_indices = @transform_4, window_bounds = array<i64: 1, 128>}, {transform_indices = @transform_5, window_bounds = array<i64: 16, 128>}]} {
    %c0_i32 = arith.constant 0 : i32
    %0 = arith.cmpi eq, %arg1, %c0_i32 : i32
    %1 = arith.extui %0 : i1 to i32
    %c0_i32_0 = arith.constant 0 : i32
    %2 = arith.cmpi ne, %1, %c0_i32_0 : i32
    scf.if %2 {
      %cst_16 = arith.constant 0.000000e+00 : f32
      %27 = vector.broadcast %cst_16 : f32 to vector<16x128xf32>
      %c0_17 = arith.constant 0 : index
      %c0_18 = arith.constant 0 : index
      %28 = vector.load %arg7[%c0_17, %c0_18] : memref<16x128xf32, #tpu.memory_space<vmem>>, vector<16x128xf32>
      tpu.vector_store %arg7[%c0_17, %c0_18], %27 {strides = array<i32>} : memref<16x128xf32, #tpu.memory_space<vmem>>, vector<16x128xf32>,
    } else {
    }
    %c0 = arith.constant 0 : index
    %c0_1 = arith.constant 0 : index
    %3 = vector.load %arg7[%c0, %c0_1] : memref<16x128xf32, #tpu.memory_space<vmem>>, vector<16x128xf32>
    %c0_2 = arith.constant 0 : index
    %c0_3 = arith.constant 0 : index
    %4 = vector.load %arg2[%c0_2, %c0_3] : memref<16x128xbf16, #tpu.memory_space<vmem>>, vector<16x128xbf16>
    %c0_4 = arith.constant 0 : index
    %c0_5 = arith.constant 0 : index
    %5 = vector.load %arg3[%c0_4, %c0_5] : memref<128x256xbf16, #tpu.memory_space<vmem>>, vector<128x256xbf16>
    %cst = arith.constant dense<0.000000e+00> : vector<16x256xf32>
    %6 = tpu.matmul %4, %5, %cst {dimension_numbers = #tpu.dot_dimension_numbers<[1], [0], [0], [1], [0, 0, 1, 1], [], []>} : vector<16x128xbf16>, vector<128x256xbf16>, vector<16x256xf32> -> vector<16x256xf32>
    %c0_6 = arith.constant 0 : index
    %c0_7 = arith.constant 0 : index
    %7 = vector.load %arg4[%c0_6, %c0_7] : memref<1x256xf32, #tpu.memory_space<vmem>>, vector<1x256xf32>
    %8 = vector.broadcast %7 : vector<1x256xf32> to vector<16x256xf32>
    %9 = arith.addf %6, %8 : vector<16x256xf32>
    %10 = vector.extract_strided_slice %9 {offsets = [0, 0], sizes = [16, 128], strides = [1, 1]} : vector<16x256xf32> to vector<16x128xf32>
    %11 = vector.extract_strided_slice %9 {offsets = [0, 128], sizes = [16, 128], strides = [1, 1]} : vector<16x256xf32> to vector<16x128xf32>
    %12 = arith.negf %11 : vector<16x128xf32>
    %13 = math.exp %12 : vector<16x128xf32>
    %cst_8 = arith.constant 1.000000e+00 : f32
    %14 = vector.broadcast %cst_8 : f32 to vector<16x128xf32>
    %15 = arith.addf %14, %13 : vector<16x128xf32>
    %16 = arith.divf %14, %15 : vector<16x128xf32>
    %17 = arith.mulf %11, %16 : vector<16x128xf32>
    %18 = arith.mulf %10, %17 : vector<16x128xf32>
    %19 = arith.truncf %18 : vector<16x128xf32> to vector<16x128xbf16>
    %c0_9 = arith.constant 0 : index
    %c0_10 = arith.constant 0 : index
    %20 = vector.load %arg5[%c0_9, %c0_10] : memref<128x128xbf16, #tpu.memory_space<vmem>>, vector<128x128xbf16>
    %cst_11 = arith.constant dense<0.000000e+00> : vector<16x128xf32>
    %21 = tpu.matmul %19, %20, %cst_11 {dimension_numbers = #tpu.dot_dimension_numbers<[1], [0], [0], [1], [0, 0, 1, 1], [], []>} : vector<16x128xbf16>, vector<128x128xbf16>, vector<16x128xf32> -> vector<16x128xf32>
    %22 = arith.addf %3, %21 : vector<16x128xf32>
    %c0_12 = arith.constant 0 : index
    %c0_13 = arith.constant 0 : index
    %23 = vector.load %arg7[%c0_12, %c0_13] : memref<16x128xf32, #tpu.memory_space<vmem>>, vector<16x128xf32>
    tpu.vector_store %arg7[%c0_12, %c0_13], %22 {strides = array<i32>} : memref<16x128xf32, #tpu.memory_space<vmem>>, vector<16x128xf32>,
    %c0_i32_14 = arith.constant 0 : i32
    %24 = arith.cmpi eq, %arg1, %c0_i32_14 : i32
    %25 = arith.extui %24 : i1 to i32
    %c0_i32_15 = arith.constant 0 : i32
    %26 = arith.cmpi ne, %25, %c0_i32_15 : i32
    scf.if %26 {
      %c0_16 = arith.constant 0 : index
      %c0_17 = arith.constant 0 : index
      %27 = vector.load %arg7[%c0_16, %c0_17] : memref<16x128xf32, #tpu.memory_space<vmem>>, vector<16x128xf32>
      %c0_18 = arith.constant 0 : index
      %c0_19 = arith.constant 0 : index
      %28 = vector.load %arg6[%c0_18, %c0_19] : memref<1x128xf32, #tpu.memory_space<vmem>>, vector<1x128xf32>
      %29 = vector.broadcast %28 : vector<1x128xf32> to vector<16x128xf32>
      %30 = arith.addf %27, %29 : vector<16x128xf32>
      %c0_20 = arith.constant 0 : index
      %c0_21 = arith.constant 0 : index
      %31 = vector.load %arg7[%c0_20, %c0_21] : memref<16x128xf32, #tpu.memory_space<vmem>>, vector<16x128xf32>
      tpu.vector_store %arg7[%c0_20, %c0_21], %30 {strides = array<i32>} : memref<16x128xf32, #tpu.memory_space<vmem>>, vector<16x128xf32>,
    } else {
    }
    return
  }
  func.func @transform_0(%arg0: i32, %arg1: i32) -> (i32, i32) {
    %c0_i32 = arith.constant 0 : i32
    %c0_i32_0 = arith.constant 0 : i32
    return %arg0, %c0_i32 : i32, i32
  }
  func.func @transform_1(%arg0: i32, %arg1: i32) -> (i32, i32) {
    %c0_i32 = arith.constant 0 : i32
    %c0_i32_0 = arith.constant 0 : i32
    return %c0_i32, %arg1 : i32, i32
  }
  func.func @transform_2(%arg0: i32, %arg1: i32) -> (i32, i32) {
    %c0_i32 = arith.constant 0 : i32
    %c0_i32_0 = arith.constant 0 : i32
    return %c0_i32, %arg1 : i32, i32
  }
  func.func @transform_3(%arg0: i32, %arg1: i32) -> (i32, i32) {
    %c0_i32 = arith.constant 0 : i32
    %c0_i32_0 = arith.constant 0 : i32
    return %arg1, %c0_i32 : i32, i32
  }
  func.func @transform_4(%arg0: i32, %arg1: i32) -> (i32, i32) {
    %c0_i32 = arith.constant 0 : i32
    %c0_i32_0 = arith.constant 0 : i32
    %c0_i32_1 = arith.constant 0 : i32
    return %c0_i32, %c0_i32_0 : i32, i32
  }
  func.func @transform_5(%arg0: i32, %arg1: i32) -> (i32, i32) {
    %c0_i32 = arith.constant 0 : i32
    %c0_i32_0 = arith.constant 0 : i32
    return %arg0, %c0_i32 : i32, i32
  }
}

</mosaic_0001>

<bundles_post_ra>
// kernel: tpu_custom_call.1
= control target key start
LH: loop header
LB: loop body
LE: loop exit
PB: predicated region body
PF: predicated region fallthrough
CT: control target
= control target key end

     0   :  { %10 = vsyncpa [#allocation3], 0  ;;  %s650_s0 = inlined_call_operand.hbm [shape: bf16[16,128], index: 0, kind: input, shape index: {}]   ;;  %s651_s1 = inlined_call_operand.hbm [shape: bf16[128,256], index: 1, kind: input, shape index: {}]   ;;  %s652_s2 = inlined_call_operand.vmem [shape: f32[1,256], index: 2, kind: input, shape index: {}]   ;;  %s653_s3 = inlined_call_operand.hbm [shape: bf16[128,128], index: 3, kind: input, shape index: {}]   ;;  %s654_s4 = inlined_call_operand.vmem [shape: f32[1,128], index: 4, kind: input, shape index: {}]   ;;  %s655_s5 = inlined_call_operand.hbm [shape: f32[16,128], index: 5, kind: output, shape index: {}]  }
   0x1   :  { %11 = vsyncpa [#allocation6], 0 }
   0x2   :  { %12 = vsyncpa [#allocation4], 0  ;;  %s585_s18 = smov [#allocation5]  }
   0x3   :  { %s30_s19 = sshll.u32 %s585_s18, 4  ;;  %s31_s19 = int_to_ptr.vmem [resolvable:$true] %s30_s19 }
   0x4   :  { %s507_s20 = scalar_lea.vmem %s31_s19, 2048  ;;  %p512_p1 = scmp.lt.s32.totalorder %s31_s19, %s31_s19 }
   0x5   :  { %p508_p0 = scmp.ne.s32.totalorder %s31_s19, %s507_s20  ;;  %p513_p2 = scmp.lt.s32.totalorder %s507_s20, %s507_s20 }
   0x7   :  { %p514_p3 = por %p513_p2, %p512_p1 }
   0x9   :  { %p515_p4 = pnand %p514_p3, %p508_p0 }
   0xb   :  { %518 = shalt.err (!%p515_p4)
}
   0xc   :  { %s586_s21 = smov 128   ;;  %s587_s22 = smov 8  }
   0xd   :  { %36 = dma.hbm_to_vmem [thread:$0]  %s651_s1, 2048, %s31_s19, [#allocation6], %s586_s21, %s586_s21, %s587_s22  }
   0xe   :  { %s588_s25 = smov [#allocation2]  }
   0xf   :  { %s18_s26 = sshll.u32 %s588_s25, 4  ;;  %s19_s26 = int_to_ptr.vmem [resolvable:$true] %s18_s26 }
  0x10   :  { %s527_s27 = scalar_lea.vmem %s19_s26, 128  ;;  %p532_p6 = scmp.lt.s32.totalorder %s19_s26, %s19_s26 }
  0x11   :  { %p528_p5 = scmp.ne.s32.totalorder %s19_s26, %s527_s27  ;;  %p533_p7 = scmp.lt.s32.totalorder %s527_s27, %s527_s27 }
  0x13   :  { %p534_p8 = por %p533_p7, %p532_p6 }
  0x15   :  { %p535_p9 = pnand %p534_p8, %p528_p5 }
  0x17   :  { %538 = shalt.err (!%p535_p9)
}
  0x18   :  { %s589_s28 = smov 64   ;;  %s590_s29 = smov 4  }
  0x19   :  { %24 = dma.hbm_to_vmem [thread:$0]  %s650_s0, 128, %s19_s26, [#allocation3], %s589_s28, %s589_s28, %s590_s29  }
  0x1a   :  { %s591_s7 = smov [#allocation7]  }
  0x1b   :  { %s44_s8 = sshll.u32 %s591_s7, 4  ;;  %s45_s8 = int_to_ptr.vmem [resolvable:$true] %s44_s8 }
  0x1c   :  { %s547_s1 = scalar_lea.vmem %s45_s8, 1024  ;;  %p552_p11 = scmp.lt.s32.totalorder %s45_s8, %s45_s8 }
  0x1d   :  { %p548_p10 = scmp.ne.s32.totalorder %s45_s8, %s547_s1  ;;  %p553_p12 = scmp.lt.s32.totalorder %s547_s1, %s547_s1 }
  0x1f   :  { %p554_p13 = por %p553_p12, %p552_p11 }
  0x21   :  { %p555_p0 = pnand %p554_p13, %p548_p10 }
  0x23   :  { %558 = shalt.err (!%p555_p0)
}
  0x24   :  { %50 = dma.hbm_to_vmem [thread:$0]  %s653_s3, 1024, %s45_s8, [#allocation6], %s589_s28, %s589_s28, %s590_s29  }
  0x25   :  { %579 = dma.done.wait [#allocation3], 128  }
  0x26   :  { %580 = vsyncadd [#allocation3], 4294967168 }
  0x27   :  { %581 = dma.done.wait [#allocation6], 3072  }
  0x28   :  { %582 = vsyncadd [#allocation6], 4294964224  ;;  %v592_v0 = vmov 0   ;;  %v458_v1 = vld [vmem:[#allocation5 + $0x74] ss:$8 sps:$4 sm:$0xff]   ;;  %v593_v19 = vmov 0.0   ;;  %v91_v27 = vlaneseq }
  0x29   :  { %219 = vmatprep.mubr.bf16.mxu0 %v592_v0  ;;  %v460_v2 = vld [vmem:[#allocation5 + $0x70] ss:$8 sps:$4 sm:$0xff]   ;;  %187 = vmatprep.subr.bf16.mxu0 %v458_v1  ;;  %v461_v3 = vld [vmem:[#allocation5 + $0x64] ss:$8 sps:$4 sm:$0xff]   ;;  %v463_v4 = vld [vmem:[#allocation5 + $0x60] ss:$8 sps:$4 sm:$0xff]  }
  0x2a   :  { %188 = vmatpush1.bf16.msra.mxu0 %v460_v2  ;;  %v464_v5 = vld [vmem:[#allocation5 + $0x54] ss:$8 sps:$4 sm:$0xff]   ;;  %v466_v6 = vld [vmem:[#allocation5 + $0x50] ss:$8 sps:$4 sm:$0xff]   ;;  %v467_v7 = vld [vmem:[#allocation5 + $0x44] ss:$8 sps:$4 sm:$0xff]   ;;  %427 = vmatprep.subr.bf16.mxu1 %v593_v19 }
  0x2b   :  { %189 = vmatprep.subr.bf16.mxu0 %v461_v3  ;;  %v469_v8 = vld [vmem:[#allocation5 + $0x40] ss:$8 sps:$4 sm:$0xff]   ;;  %v470_v9 = vld [vmem:[#allocation5 + $0x34] ss:$8 sps:$4 sm:$0xff]   ;;  %v472_v10 = vld [vmem:[#allocation5 + $0x30] ss:$8 sps:$4 sm:$0xff]  }
  0x2c   :  { %v473_v11 = vld [vmem:[#allocation5 + $0x24] ss:$8 sps:$4 sm:$0xff]   ;;  %v475_v12 = vld [vmem:[#allocation5 + $0x20] ss:$8 sps:$4 sm:$0xff]   ;;  %v476_v13 = vld [vmem:[#allocation5 + $0x14] ss:$8 sps:$4 sm:$0xff]  }
  0x2d   :  { %v478_v14 = vld [vmem:[#allocation5 + $0x10] ss:$8 sps:$4 sm:$0xff]   ;;  %v479_v15 = vld [vmem:[#allocation5 + $0x4] ss:$8 sps:$4 sm:$0xff]   ;;  %v481_v16 = vld [vmem:[#allocation5] ss:$8 sps:$4 sm:$0xff]  }
  0x2e   :  { %190 = vmatpush1.bf16.msra.mxu0 %v463_v4  ;;  %v482_v17 = vld [vmem:[#allocation2] sm:$0xff]   ;;  %v484_v20 = vld [vmem:[#allocation7 + $0x30] sm:$0xff]   ;;  %v485_v21 = vld [vmem:[#allocation7 + $0x28] sm:$0xff]   ;;  %vm594_vm0 = vmmov 0   ;;  %v92_v28 = vshrl.u32 %v91_v27, 7  ;;  %s595_s12 = smov [#allocation8]  }
  0x2f   :  { %191 = vmatprep.subr.bf16.mxu0 %v464_v5  ;;  %v483_v18 = vld [vmem:[#allocation7 + $0x38] sm:$0xff]   ;;  %v486_v22 = vld [vmem:[#allocation7 + $0x20] sm:$0xff]   ;;  %v488_v24 = vld [vmem:[#allocation7 + $0x10] sm:$0xff]   ;;  %443 = vmatprep.mubr.msk.bf16.mxu1 %vm594_vm0, %v593_v19  ;;  %s377_s13 = sshll.u32 %s595_s12, 4  ;;  %s378_s13 = int_to_ptr.vmem [resolvable:$true] %s377_s13 }
  0x30   :  { %428 = vmatpush3.bf16.msra.mxu1 %v483_v18  ;;  %v487_v23 = vld [vmem:[#allocation7 + $0x18] sm:$0xff]   ;;  %v489_v25 = vld [vmem:[#allocation7 + $0x8] sm:$0xff]   ;;  %v490_v26 = vld [vmem:[#allocation7] sm:$0xff]   ;;  %v97_v29 = vsub.s32 1, %v92_v28  ;;  %v93_v44 = vsub.s32 0, %v92_v28  ;;  %s559_s14 = scalar_lea.vmem %s378_s13, 256  ;;  %p564_p2 = scmp.lt.s32.totalorder %s378_s13, %s378_s13 }
  0x31   :  { %429 = vmatprep.subr.bf16.mxu1 %v593_v19  ;;  %v89_v30 = vld [vmem:[%s652_s2] sm:$0x3]  ;;  %p560_p1 = scmp.ne.s32.totalorder %s378_s13, %s559_s14  ;;  %p565_p3 = scmp.lt.s32.totalorder %s559_s14, %s559_s14 }
  0x32   :  { %192 = vmatpush1.bf16.msra.mxu0 %v466_v6  ;;  %v98_v31 = vrot.slane %v89_v30, %v97_v29  ;;  %v94_v46 = vrot.slane %v89_v30, %v93_v44  ;;  %v417_v56 = vld [vmem:[%s654_s4] ss:$0 sm:$0xff] }
  0x33   :  { %193 = vmatprep.subr.bf16.mxu0 %v467_v7  ;;  %p566_p4 = por %p565_p3, %p564_p2 }
  0x34   :  { %430 = vmatpush3.bf16.msra.mxu1 %v484_v20 }
  0x35   :  { %431 = vmatprep.subr.bf16.mxu1 %v593_v19  ;;  %p567_p5 = pnand %p566_p4, %p560_p1 }
  0x36   :  { %194 = vmatpush1.bf16.msra.mxu0 %v469_v8 }
  0x37   :  { %195 = vmatprep.subr.bf16.mxu0 %v470_v9 }
  0x38   :  { %432 = vmatpush3.bf16.msra.mxu1 %v485_v21 }
  0x39   :  { %433 = vmatprep.subr.bf16.mxu1 %v593_v19 }
  0x3a   :  { %196 = vmatpush1.bf16.msra.mxu0 %v472_v10 }
  0x3b   :  { %197 = vmatprep.subr.bf16.mxu0 %v473_v11 }
  0x3c   :  { %434 = vmatpush3.bf16.msra.mxu1 %v486_v22 }
  0x3d   :  { %435 = vmatprep.subr.bf16.mxu1 %v593_v19 }
  0x3e   :  { %198 = vmatpush1.bf16.msra.mxu0 %v475_v12 }
  0x3f   :  { %199 = vmatprep.subr.bf16.mxu0 %v476_v13 }
  0x40   :  { %436 = vmatpush3.bf16.msra.mxu1 %v487_v23 }
  0x41   :  { %437 = vmatprep.subr.bf16.mxu1 %v593_v19 }
  0x42   :  { %200 = vmatpush1.bf16.msra.mxu0 %v478_v14 }
  0x43   :  { %201 = vmatprep.subr.bf16.mxu0 %v479_v15 }
  0x44   :  { %438 = vmatpush3.bf16.msra.mxu1 %v488_v24 }
  0x45   :  { %439 = vmatprep.subr.bf16.mxu1 %v593_v19 }
  0x46   :  { %202 = vmatpush1.bf16.msra.mxu0 %v481_v16 }
  0x48   :  { %440 = vmatpush3.bf16.msra.mxu1 %v489_v25 }
  0x49   :  { %220 = vmatmul.mubr.bf16.vlgmr.msra.gmra.mxu0 %v482_v17  ;;  %441 = vmatprep.subr.bf16.mxu1 %v593_v19 }
  0x4c   :  { %442 = vmatpush3.bf16.msra.mxu1 %v490_v26 }
 0x109   :  { %v221_v32 = vpop.f32.mrf.mxu0 }
 0x10a   :  { %v222_v49 = vadd.f32 %v221_v32, %v94_v46 }
 0x10b   :  { %v223_v33 = vpop.f32.mrf.mxu0 }
 0x10c   :  { %v224_v34 = vadd.f32 %v223_v33, %v98_v31 }
 0x10d   :  { %v225_v35 = vpop.f32.mrf.mxu0 }
 0x10e   :  { %v407_v36 = vmul.f32 -1.442695, %v224_v34  ;;  %v226_v50 = vadd.f32 %v225_v35, %v94_v46 }
 0x10f   :  { %v227_v37 = vpop.f32.mrf.mxu0 }
 0x110   :  { %491 = vpow2.f32 %v407_v36  ;;  %v228_v38 = vadd.f32 %v227_v37, %v98_v31 }
 0x112   :  { %v408_v39 = vmul.f32 -1.442695, %v228_v38 }
 0x114   :  { %493 = vpow2.f32 %v408_v39 }
 0x11d   :  { %v492_v40 = vpop.eup %491 }
 0x11e   :  { %v236_v41 = vadd.f32 1.0, %v492_v40 }
 0x120   :  { %495 = vrcp.f32 %v236_v41 }
 0x121   :  { %v494_v42 = vpop.eup %493 }
 0x122   :  { %v237_v43 = vadd.f32 1.0, %v494_v42 }
 0x124   :  { %497 = vrcp.f32 %v237_v43 }
 0x12d   :  { %v496_v45 = vpop.eup %495 }
 0x12e   :  { %v242_v47 = vmul.f32 %v496_v45, %v224_v34 }
 0x130   :  { %v244_v52 = vmul.f32 %v242_v47, %v222_v49 }
 0x131   :  { %v498_v48 = vpop.eup %497 }
 0x132   :  { %v243_v51 = vmul.f32 %v498_v48, %v228_v38 }
 0x134   :  { %v245_v53 = vmul.f32 %v243_v51, %v226_v50 }
 0x136   :  { %v246_v54 = vpack.c.bf16 %v245_v53, %v244_v52 }
 0x138   :  { %444 = vmatmul.mubr.bf16.vlgmr.msra.gmra.mxu1 %v246_v54 }
 0x1f8   :  { %v345_v55 = vpop.f32.mrf.mxu1 }
 0x1f9   :  { %v368_v58 = vadd.f32 %v417_v56, %v345_v55 }
 0x1fa   :  { %v445_v57 = vpop.f32.mrf.mxu1 }
 0x1fb   :  { %370 = vst [vmem:[#allocation8] sm:$0xff] %v368_v58 }
 0x1fc   :  { %v348_v59 = vpop.f32.mrf.mxu1 }
 0x1fd   :  { %v369_v61 = vadd.f32 %v417_v56, %v348_v59 }
 0x1fe   :  { %v446_v60 = vpop.f32.mrf.mxu1 }
 0x1ff   :  { %371 = vst [vmem:[#allocation8 + $0x8] sm:$0xff] %v369_v61 }
 0x200   :  { %570 = shalt.err (!%p567_p5)
}
 0x201   :  { %383 = dma.vmem_to_hbm [thread:$0]  %s378_s13, 256, %s655_s5, [#allocation4], %s586_s21, %s586_s21, %s587_s22  }
 0x202   :  { %583 = dma.done.wait [#allocation4], 256  }
 0x203   :  { %584 = vsyncadd [#allocation4], 4294967040 }
 0x204   :  { %387 = vsyncpa [#allocation3], 1 }
 0x205   :  { %388 = vsyncpa [#allocation6], 1 }
 0x206   :  { %389 = vsyncpa [#allocation4], 1 }

</bundles_post_ra>
